<compile_context>
chip_gen: v5e
topology: v5e:2x2
jax: 0.10.0
libtpu: 0.0.40
codegen_flags: <defaults>
</compile_context>

<pallas_src>
import functools
import math

import jax
import jax.numpy as jnp
from jax.experimental import pallas as pl
from jax.experimental.pallas import tpu as pltpu


def _linear_kernel(*refs, fuse_relu_bn):
    if fuse_relu_bn:
        x_ref, w_ref, b_ref, scale_ref, shift_ref, o_ref, acc_ref = refs
    else:
        x_ref, w_ref, b_ref, o_ref, acc_ref = refs
        scale_ref = shift_ref = None

    k = pl.program_id(2)

    @pl.when(k == 0)
    def _():
        acc_ref[...] = jnp.zeros_like(acc_ref)

    # bf16 x bf16 -> f32 accumulate on the MXU.
    acc_ref[...] += jnp.dot(
        x_ref[...], w_ref[...], preferred_element_type=jnp.float32
    )

    @pl.when(k == pl.num_programs(2) - 1)
    def _():
        y = acc_ref[...] + b_ref[...]                  # bias once, in epilogue
        if fuse_relu_bn:
            y = jnp.maximum(y, 0.0)                    # ReLU
            y = y * scale_ref[...] + shift_ref[...]    # BatchNorm1d (inference)
        o_ref[...] = y.astype(o_ref.dtype)


def _round_up(v, m):
    return (v + m - 1) // m * m


def fused_linear(x, w_t, b, scale=None, shift=None, *,
                 tm=256, tn=512, tk=512, out_dtype=jnp.float32):
    """y = act(x @ w_t + b); act = (ReLU then scale/shift) if scale is given.

    x: [M, K] (any float dtype), w_t: [K, N] (weight pre-transposed),
    b / scale / shift: [N].  Returns [M, N] in out_dtype.
    """
    M, K = x.shape
    K2, N = w_t.shape
    assert K == K2, (K, K2)
    fuse = scale is not None

    # Pad to MXU / lane-friendly shapes (sublane mult of 8, lane/K mult of 128).
    Mp, Kp, Np = _round_up(M, 8), _round_up(K, 128), _round_up(N, 128)
    tm, tk, tn = min(tm, Mp), min(tk, Kp), min(tn, Np)
    Mp, Kp, Np = _round_up(Mp, tm), _round_up(Kp, tk), _round_up(Np, tn)

    x_p = jnp.zeros((Mp, Kp), jnp.bfloat16).at[:M, :K].set(x.astype(jnp.bfloat16))
    w_p = jnp.zeros((Kp, Np), jnp.bfloat16).at[:K, :N].set(w_t.astype(jnp.bfloat16))
    b_p = jnp.zeros((1, Np), jnp.float32).at[:, :N].set(
        b.reshape(1, N).astype(jnp.float32))

    inputs = [x_p, w_p, b_p]
    in_specs = [
        pl.BlockSpec((tm, tk), lambda i, j, k: (i, k)),
        pl.BlockSpec((tk, tn), lambda i, j, k: (k, j)),
        pl.BlockSpec((1, tn), lambda i, j, k: (0, j)),   # resident across K
    ]
    if fuse:
        s_p = jnp.zeros((1, Np), jnp.float32).at[:, :N].set(
            scale.reshape(1, N).astype(jnp.float32))
        t_p = jnp.zeros((1, Np), jnp.float32).at[:, :N].set(
            shift.reshape(1, N).astype(jnp.float32))
        inputs += [s_p, t_p]
        in_specs += [pl.BlockSpec((1, tn), lambda i, j, k: (0, j)),
                     pl.BlockSpec((1, tn), lambda i, j, k: (0, j))]

    flops = 2 * Mp * Np * Kp
    bytes_accessed = ((x_p.size + w_p.size) * 2          # bf16 operands
                      + Mp * Np * 4                       # f32 output
                      + (3 if fuse else 1) * Np * 4)      # bias (+ scale/shift)

    out = pl.pallas_call(
        functools.partial(_linear_kernel, fuse_relu_bn=fuse),
        out_shape=jax.ShapeDtypeStruct((Mp, Np), out_dtype),
        grid_spec=pltpu.PrefetchScalarGridSpec(
            num_scalar_prefetch=0,
            grid=(Mp // tm, Np // tn, Kp // tk),
            in_specs=in_specs,
            out_specs=pl.BlockSpec((tm, tn), lambda i, j, k: (i, j)),
            scratch_shapes=[pltpu.VMEM((tm, tn), jnp.float32)],
        ),
        compiler_params=pltpu.CompilerParams(
            dimension_semantics=("parallel", "parallel", "arbitrary"),
        ),
        cost_estimate=pl.CostEstimate(
            flops=flops, transcendentals=0, bytes_accessed=bytes_accessed),
    )(*inputs)
    return out[:M, :N]


def classifier_forward(x, params):
    """Classifier forward (inference): Linear -> ReLU -> BN -> Dropout -> Linear."""
    h = fused_linear(x, params["w1_t"], params["b1"],
                     scale=params["bn_scale"], shift=params["bn_shift"])
    # Dropout: identity at inference.
    y = fused_linear(h, params["w2_t"], params["b2"])
    return y


def init_classifier_params(key, in_dim, hidden_clf, num_class,
                           dtype=jnp.float32, eps=1e-5):
    """Deterministic init mirroring the PyTorch module:
       - Linear weights: xavier_uniform_; biases: uniform(+/- 1/sqrt(fan_in)).
       - BatchNorm1d folded into per-channel scale/shift for inference
         (random affine / running stats here so the fused path is exercised)."""
    k1, k2, k3, k4, k5, k6, k7, k8 = jax.random.split(key, 8)
    lim1 = math.sqrt(6.0 / (in_dim + hidden_clf))
    w1 = jax.random.uniform(k1, (hidden_clf, in_dim), dtype, -lim1, lim1)
    b1 = jax.random.uniform(k2, (hidden_clf,), dtype,
                            -1.0 / math.sqrt(in_dim), 1.0 / math.sqrt(in_dim))

    gamma = jax.random.uniform(k3, (hidden_clf,), dtype, 0.5, 1.5)
    beta = jax.random.uniform(k4, (hidden_clf,), dtype, -0.5, 0.5)
    running_mean = jax.random.normal(k5, (hidden_clf,), dtype) * 0.1
    running_var = jax.random.uniform(k6, (hidden_clf,), dtype, 0.5, 1.5)
    bn_scale = gamma / jnp.sqrt(running_var + eps)
    bn_shift = beta - running_mean * bn_scale

    lim2 = math.sqrt(6.0 / (hidden_clf + num_class))
    w2 = jax.random.uniform(k7, (num_class, hidden_clf), dtype, -lim2, lim2)
    b2 = jax.random.uniform(k8, (num_class,), dtype,
                            -1.0 / math.sqrt(hidden_clf),
                            1.0 / math.sqrt(hidden_clf))
    return dict(w1_t=w1.T, b1=b1, bn_scale=bn_scale, bn_shift=bn_shift,
                w2_t=w2.T, b2=b2)


def classifier_reference(x, p):
    """Pure-JAX reference with the same bf16/f32 mixed-precision recipe."""
    h = jnp.dot(x.astype(jnp.bfloat16), p["w1_t"].astype(jnp.bfloat16),
                preferred_element_type=jnp.float32) + p["b1"][None, :]
    h = jnp.maximum(h, 0.0)
    h = h * p["bn_scale"][None, :] + p["bn_shift"][None, :]
    y = jnp.dot(h.astype(jnp.bfloat16), p["w2_t"].astype(jnp.bfloat16),
                preferred_element_type=jnp.float32) + p["b2"][None, :]
    return y


if __name__ == "__main__":
    key = jax.random.PRNGKey(0)
    k_x, k_p = jax.random.split(key)

    # Classifier(num_class=8, hidden_dim_tab=16, hidden_dim_img=16,
    #            hidden_dim_clf=64, p=0.1); input is [batch, tab + img].
    batch = 16
    hidden_dim_tab, hidden_dim_img = 16, 16
    hidden_dim_clf, num_class = 64, 8
    in_dim = hidden_dim_tab + hidden_dim_img

    x = jax.random.normal(k_x, (batch, in_dim), jnp.float32)
    params = init_classifier_params(k_p, in_dim, hidden_dim_clf, num_class)

    y = classifier_forward(x, params)
    jax.block_until_ready(y)

    y_ref = classifier_reference(x, params)
    assert y.shape == (batch, num_class), y.shape
    assert jnp.allclose(y, y_ref, atol=5e-3, rtol=5e-3), (
        float(jnp.max(jnp.abs(y - y_ref))))

    print("KERNEL_OK")
</pallas_src>

<mosaic_0001>
module attributes {stable_mosaic.version = 11 : i64} {
  func.func @_linear_kernel(%arg0: i32, %arg1: i32, %arg2: i32, %arg3: memref<16x128xbf16, #tpu.memory_space<vmem>>, %arg4: memref<128x128xbf16, #tpu.memory_space<vmem>>, %arg5: memref<1x128xf32, #tpu.memory_space<vmem>>, %arg6: memref<1x128xf32, #tpu.memory_space<vmem>>, %arg7: memref<1x128xf32, #tpu.memory_space<vmem>>, %arg8: memref<16x128xf32, #tpu.memory_space<vmem>>, %arg9: memref<16x128xf32, #tpu.memory_space<vmem>>) attributes {dimension_semantics = [#tpu.dimension_semantics<parallel>, #tpu.dimension_semantics<parallel>, #tpu.dimension_semantics<arbitrary>], iteration_bounds = array<i64: 1, 1, 1>, scalar_prefetch = 0 : i64, scratch_operands = 1 : i64, tpu.core_type = #tpu.core_type<tc>, window_params = [{transform_indices = @transform_0, window_bounds = array<i64: 16, 128>}, {transform_indices = @transform_1, window_bounds = array<i64: 128, 128>}, {transform_indices = @transform_2, window_bounds = array<i64: 1, 128>}, {transform_indices = @transform_3, window_bounds = array<i64: 1, 128>}, {transform_indices = @transform_4, window_bounds = array<i64: 1, 128>}, {transform_indices = @transform_5, window_bounds = array<i64: 16, 128>}]} {
    %c0_i32 = arith.constant 0 : i32
    %0 = arith.cmpi eq, %arg2, %c0_i32 : i32
    %1 = arith.extui %0 : i1 to i32
    %c0_i32_0 = arith.constant 0 : i32
    %2 = arith.cmpi ne, %1, %c0_i32_0 : i32
    scf.if %2 {
      %cst_10 = arith.constant 0.000000e+00 : f32
      %12 = vector.broadcast %cst_10 : f32 to vector<16x128xf32>
      %c0_11 = arith.constant 0 : index
      %c0_12 = arith.constant 0 : index
      %13 = vector.load %arg9[%c0_11, %c0_12] : memref<16x128xf32, #tpu.memory_space<vmem>>, vector<16x128xf32>
      tpu.vector_store %arg9[%c0_11, %c0_12], %12 {strides = array<i32>} : memref<16x128xf32, #tpu.memory_space<vmem>>, vector<16x128xf32>,
    } else {
    }
    %c0 = arith.constant 0 : index
    %c0_1 = arith.constant 0 : index
    %3 = vector.load %arg9[%c0, %c0_1] : memref<16x128xf32, #tpu.memory_space<vmem>>, vector<16x128xf32>
    %c0_2 = arith.constant 0 : index
    %c0_3 = arith.constant 0 : index
    %4 = vector.load %arg3[%c0_2, %c0_3] : memref<16x128xbf16, #tpu.memory_space<vmem>>, vector<16x128xbf16>
    %c0_4 = arith.constant 0 : index
    %c0_5 = arith.constant 0 : index
    %5 = vector.load %arg4[%c0_4, %c0_5] : memref<128x128xbf16, #tpu.memory_space<vmem>>, vector<128x128xbf16>
    %cst = arith.constant dense<0.000000e+00> : vector<16x128xf32>
    %6 = tpu.matmul %4, %5, %cst {dimension_numbers = #tpu.dot_dimension_numbers<[1], [0], [0], [1], [0, 0, 1, 1], [], []>} : vector<16x128xbf16>, vector<128x128xbf16>, vector<16x128xf32> -> vector<16x128xf32>
    %7 = arith.addf %3, %6 : vector<16x128xf32>
    %c0_6 = arith.constant 0 : index
    %c0_7 = arith.constant 0 : index
    %8 = vector.load %arg9[%c0_6, %c0_7] : memref<16x128xf32, #tpu.memory_space<vmem>>, vector<16x128xf32>
    tpu.vector_store %arg9[%c0_6, %c0_7], %7 {strides = array<i32>} : memref<16x128xf32, #tpu.memory_space<vmem>>, vector<16x128xf32>,
    %c0_i32_8 = arith.constant 0 : i32
    %9 = arith.cmpi eq, %arg2, %c0_i32_8 : i32
    %10 = arith.extui %9 : i1 to i32
    %c0_i32_9 = arith.constant 0 : i32
    %11 = arith.cmpi ne, %10, %c0_i32_9 : i32
    scf.if %11 {
      %c0_10 = arith.constant 0 : index
      %c0_11 = arith.constant 0 : index
      %12 = vector.load %arg9[%c0_10, %c0_11] : memref<16x128xf32, #tpu.memory_space<vmem>>, vector<16x128xf32>
      %c0_12 = arith.constant 0 : index
      %c0_13 = arith.constant 0 : index
      %13 = vector.load %arg5[%c0_12, %c0_13] : memref<1x128xf32, #tpu.memory_space<vmem>>, vector<1x128xf32>
      %14 = vector.broadcast %13 : vector<1x128xf32> to vector<16x128xf32>
      %15 = arith.addf %12, %14 : vector<16x128xf32>
      %cst_14 = arith.constant 0.000000e+00 : f32
      %16 = vector.broadcast %cst_14 : f32 to vector<16x128xf32>
      %17 = arith.maximumf %15, %16 : vector<16x128xf32>
      %c0_15 = arith.constant 0 : index
      %c0_16 = arith.constant 0 : index
      %18 = vector.load %arg6[%c0_15, %c0_16] : memref<1x128xf32, #tpu.memory_space<vmem>>, vector<1x128xf32>
      %19 = vector.broadcast %18 : vector<1x128xf32> to vector<16x128xf32>
      %20 = arith.mulf %17, %19 : vector<16x128xf32>
      %c0_17 = arith.constant 0 : index
      %c0_18 = arith.constant 0 : index
      %21 = vector.load %arg7[%c0_17, %c0_18] : memref<1x128xf32, #tpu.memory_space<vmem>>, vector<1x128xf32>
      %22 = vector.broadcast %21 : vector<1x128xf32> to vector<16x128xf32>
      %23 = arith.addf %20, %22 : vector<16x128xf32>
      %c0_19 = arith.constant 0 : index
      %c0_20 = arith.constant 0 : index
      %24 = vector.load %arg8[%c0_19, %c0_20] : memref<16x128xf32, #tpu.memory_space<vmem>>, vector<16x128xf32>
      tpu.vector_store %arg8[%c0_19, %c0_20], %23 {strides = array<i32>} : memref<16x128xf32, #tpu.memory_space<vmem>>, vector<16x128xf32>,
    } else {
    }
    return
  }
  func.func @transform_0(%arg0: i32, %arg1: i32, %arg2: i32) -> (i32, i32) {
    %c0_i32 = arith.constant 0 : i32
    return %arg0, %arg2 : i32, i32
  }
  func.func @transform_1(%arg0: i32, %arg1: i32, %arg2: i32) -> (i32, i32) {
    %c0_i32 = arith.constant 0 : i32
    return %arg2, %arg1 : i32, i32
  }
  func.func @transform_2(%arg0: i32, %arg1: i32, %arg2: i32) -> (i32, i32) {
    %c0_i32 = arith.constant 0 : i32
    %c0_i32_0 = arith.constant 0 : i32
    return %c0_i32, %arg1 : i32, i32
  }
  func.func @transform_3(%arg0: i32, %arg1: i32, %arg2: i32) -> (i32, i32) {
    %c0_i32 = arith.constant 0 : i32
    %c0_i32_0 = arith.constant 0 : i32
    return %c0_i32, %arg1 : i32, i32
  }
  func.func @transform_4(%arg0: i32, %arg1: i32, %arg2: i32) -> (i32, i32) {
    %c0_i32 = arith.constant 0 : i32
    %c0_i32_0 = arith.constant 0 : i32
    return %c0_i32, %arg1 : i32, i32
  }
  func.func @transform_5(%arg0: i32, %arg1: i32, %arg2: i32) -> (i32, i32) {
    %c0_i32 = arith.constant 0 : i32
    return %arg0, %arg1 : i32, i32
  }
}

</mosaic_0001>

<bundles_post_ra>
// kernel: tpu_custom_call.1
= control target key start
LH: loop header
LB: loop body
LE: loop exit
PB: predicated region body
PF: predicated region fallthrough
CT: control target
= control target key end

     0   :  { %10 = vsyncpa [#allocation4], 0  ;;  %s386_s0 = inlined_call_operand.hbm [shape: bf16[16,128], index: 0, kind: input, shape index: {}]   ;;  %s387_s1 = inlined_call_operand.hbm [shape: bf16[128,128], index: 1, kind: input, shape index: {}]   ;;  %s388_s2 = inlined_call_operand.vmem [shape: f32[1,128], index: 2, kind: input, shape index: {}]   ;;  %s389_s3 = inlined_call_operand.vmem [shape: f32[1,128], index: 3, kind: input, shape index: {}]   ;;  %s390_s4 = inlined_call_operand.vmem [shape: f32[1,128], index: 4, kind: input, shape index: {}]   ;;  %s391_s5 = inlined_call_operand.hbm [shape: f32[16,128], index: 5, kind: output, shape index: {}]  }
   0x1   :  { %11 = vsyncpa [#allocation7], 0 }
   0x2   :  { %12 = vsyncpa [#allocation5], 0  ;;  %s17_s20 = sshll.u32 %s386_s0, 4  ;;  %s331_s21 = smov [#allocation3]   ;;  %s18_s20 = int_to_ptr.hbm [resolvable:$true] %s17_s20 }
   0x3   :  { %s19_s22 = sshll.u32 %s331_s21, 4  ;;  %s30_s25 = sshll.u32 %s387_s1, 4  ;;  %s20_s22 = int_to_ptr.vmem [resolvable:$true] %s19_s22  ;;  %s31_s25 = int_to_ptr.hbm [resolvable:$true] %s30_s25 }
   0x4   :  { %s332_s26 = smov 64   ;;  %s333_s27 = smov 4  }
   0x5   :  { %25 = dma.hbm_to_vmem [thread:$0]  %s18_s20, 128, %s20_s22, [#allocation4], %s332_s26, %s332_s26, %s333_s27  }
   0x6   :  { %s334_s28 = smov [#allocation6]  }
   0x7   :  { %s32_s29 = sshll.u32 %s334_s28, 4  ;;  %s33_s29 = int_to_ptr.vmem [resolvable:$true] %s32_s29 }
   0x8   :  { %38 = dma.hbm_to_vmem [thread:$0]  %s31_s25, 1024, %s33_s29, [#allocation7], %s332_s26, %s332_s26, %s333_s27  }
   0x9   :  { %325 = dma.done.wait [#allocation4], 128  }
   0xa   :  { %326 = vsyncadd [#allocation4], 4294967168 }
   0xb   :  { %327 = dma.done.wait [#allocation7], 1024  }
   0xc   :  { %328 = vsyncadd [#allocation7], 4294966272  ;;  %v242_v0 = vld [vmem:[#allocation6 + $0x38] sm:$0xff]  ;;  %v241_v1 = vld [vmem:[#allocation6 + $0x30] sm:$0xff]  ;;  %s335_s9 = smov [#allocation8]   ;;  %s184_s12 = sshll.u32 %s391_s5, 4  ;;  %s185_s12 = int_to_ptr.hbm [resolvable:$true] %s184_s12 }
   0xd   :  { %133 = vmatpush.bf16.msra.mxu0 %v242_v0  ;;  %v240_v2 = vld [vmem:[#allocation6 + $0x28] sm:$0xff]  ;;  %v239_v3 = vld [vmem:[#allocation6 + $0x20] sm:$0xff]  ;;  %v238_v4 = vld [vmem:[#allocation6 + $0x18] sm:$0xff]  ;;  %s182_s10 = sshll.u32 %s335_s9, 4  ;;  %s337_s13 = smov 8   ;;  %s183_s10 = int_to_ptr.vmem [resolvable:$true] %s182_s10 }
   0xe   :  { %v237_v5 = vld [vmem:[#allocation6 + $0x10] sm:$0xff]  ;;  %v236_v6 = vld [vmem:[#allocation6 + $0x8] sm:$0xff]  ;;  %v235_v7 = vld [vmem:[#allocation6] sm:$0xff] }
   0xf   :  { %v234_v8 = vld [vmem:[#allocation3] sm:$0xff] }
  0x10   :  { %v250_v9 = vld [vmem:[%s388_s2] ss:$0 sm:$0xff] }
  0x11   :  { %134 = vmatpush.bf16.msra.mxu0 %v241_v1  ;;  %v251_v12 = vld [vmem:[%s389_s3] ss:$0 sm:$0xff]  ;;  %s336_s3 = smov 128  }
  0x12   :  { %v252_v14 = vld [vmem:[%s390_s4] ss:$0 sm:$0xff] }
  0x15   :  { %135 = vmatpush.bf16.msra.mxu0 %v240_v2 }
  0x19   :  { %136 = vmatpush.bf16.msra.mxu0 %v239_v3 }
  0x1d   :  { %137 = vmatpush.bf16.msra.mxu0 %v238_v4 }
  0x21   :  { %138 = vmatpush.bf16.msra.mxu0 %v237_v5 }
  0x25   :  { %139 = vmatpush.bf16.msra.mxu0 %v236_v6 }
  0x29   :  { %140 = vmatpush.bf16.msra.mxu0 %v235_v7 }
  0x2c   :  { %141 = vmatmul.bf16.vlgmr.msra.gmra.mxu0 %v234_v8 }
  0xa9   :  { %v142_v10 = vpop.f32.mrf.mxu0 }
  0xaa   :  { %v160_v11 = vadd.f32 %v250_v9, %v142_v10 }
  0xac   :  { %v162_v13 = vmax.f32 %v160_v11, 0.0 }
  0xae   :  { %v168_v15 = vmul.f32 %v251_v12, %v162_v13 }
  0xb0   :  { %v174_v16 = vadd.f32 %v252_v14, %v168_v15 }
  0xb1   :  { %v144_v17 = vpop.f32.mrf.mxu0 }
  0xb2   :  { %176 = vst [vmem:[#allocation8] sm:$0xff] %v174_v16  ;;  %v161_v18 = vadd.f32 %v250_v9, %v144_v17 }
  0xb4   :  { %v163_v19 = vmax.f32 %v161_v18, 0.0 }
  0xb6   :  { %v169_v20 = vmul.f32 %v251_v12, %v163_v19 }
  0xb8   :  { %v175_v21 = vadd.f32 %v252_v14, %v169_v20 }
  0xba   :  { %177 = vst [vmem:[#allocation8 + $0x8] sm:$0xff] %v175_v21 }
  0xbb   :  { %190 = dma.vmem_to_hbm [thread:$0]  %s183_s10, 256, %s185_s12, [#allocation5], %s336_s3, %s336_s3, %s337_s13  }
  0xbc   :  { %329 = dma.done.wait [#allocation5], 256  }
  0xbd   :  { %330 = vsyncadd [#allocation5], 4294967040 }
  0xbe   :  { %195 = vsyncpa [#allocation4], 1 }
  0xbf   :  { %196 = vsyncpa [#allocation7], 1 }
  0xc0   :  { %197 = vsyncpa [#allocation5], 1 }

</bundles_post_ra>
